<compile_context>
chip_gen: v7x
topology: tpu7x:2x2x1
jax: 0.10.0
libtpu: 0.0.40
codegen_flags: <defaults>
</compile_context>

<pallas_src>
import jax
import jax.numpy as jnp
from jax.experimental import pallas as pl
from jax.experimental.pallas import tpu as pltpu


def _dma_copy_kernel(x_hbm, o_hbm, sem):
    # Single whole-array DMA copy: no grid, no VMEM staging.
    cp = pltpu.make_async_copy(x_hbm, o_hbm, sem)
    cp.start()
    cp.wait()


def _squeeze_shape(shape):
    """Output shape of torch's x.squeeze(2).squeeze(2).

    torch.squeeze(dim) removes the dim only if it has size 1; otherwise it is
    a no-op. Applied twice at dim 2.
    """
    shape = list(shape)
    for _ in range(2):
        if len(shape) > 2 and shape[2] == 1:
            shape.pop(2)
    return tuple(shape)


def squeeze_extractor(x):
    """Pallas implementation of SqueezeExtractor.forward.

    (N, C, 1, 1) -> (N, C); (N, C, 1, W) -> (N, C, W); otherwise unchanged
    (matching torch's no-op-on-non-unit-dims semantics).
    """
    out_shape = _squeeze_shape(x.shape)

    # Free metadata-only squeeze of the unit dims (no data movement needed for
    # the op itself).
    x2 = x if out_shape == tuple(x.shape) else x.reshape(out_shape)

    nbytes = x2.size * jnp.dtype(x2.dtype).itemsize

    return pl.pallas_call(
        _dma_copy_kernel,
        out_shape=jax.ShapeDtypeStruct(out_shape, x.dtype),
        in_specs=[pl.BlockSpec(memory_space=pl.ANY)],
        out_specs=pl.BlockSpec(memory_space=pl.ANY),
        scratch_shapes=[pltpu.SemaphoreType.DMA],
        compiler_params=pltpu.CompilerParams(has_side_effects=True),
        cost_estimate=pl.CostEstimate(
            flops=0, transcendentals=0, bytes_accessed=2 * nbytes
        ),
    )(x2)


if __name__ == "__main__":
    key = jax.random.PRNGKey(0)

    # Canonical module input: (batch=2, channels=4, 1, 1) -> (2, 4)
    x = jax.random.normal(key, (2, 4, 1, 1), dtype=jnp.float32)
    y = jax.block_until_ready(squeeze_extractor(x))
    ref = jnp.squeeze(jnp.squeeze(x, axis=2), axis=2)
    assert y.shape == (2, 4), y.shape
    assert y.dtype == x.dtype
    assert bool(jnp.allclose(y, ref)), "mismatch vs reference squeeze"

    # Larger lane-aligned case: (64, 256, 1, 1) -> (64, 256)
    x2 = jax.random.normal(key, (64, 256, 1, 1), dtype=jnp.float32)
    y2 = jax.block_until_ready(squeeze_extractor(x2))
    ref2 = jnp.squeeze(jnp.squeeze(x2, axis=2), axis=2)
    assert y2.shape == (64, 256), y2.shape
    assert bool(jnp.allclose(y2, ref2)), "mismatch vs reference squeeze (large)"

    # Non-unit spatial dims: torch's squeeze(2).squeeze(2) is a no-op.
    x3 = jax.random.normal(key, (2, 4, 16, 16), dtype=jnp.float32)
    y3 = jax.block_until_ready(squeeze_extractor(x3))
    assert y3.shape == (2, 4, 16, 16), y3.shape
    assert bool(jnp.allclose(y3, x3)), "mismatch vs no-op squeeze"

    # H == 1, W != 1: only the first squeeze fires -> (N, C, W)
    x4 = jax.random.normal(key, (2, 4, 1, 8), dtype=jnp.float32)
    y4 = jax.block_until_ready(squeeze_extractor(x4))
    ref4 = jnp.squeeze(x4, axis=2)
    assert y4.shape == (2, 4, 8), y4.shape
    assert bool(jnp.allclose(y4, ref4)), "mismatch vs single squeeze"

    print("KERNEL_OK")
</pallas_src>

<mosaic_0001>
module attributes {stable_mosaic.version = 11 : i64} {
  func.func @_dma_copy_kernel(%arg0: memref<2x4xf32, #tpu.memory_space<any>>, %arg1: memref<2x4xf32, #tpu.memory_space<any>>, %arg2: memref<!tpu.dma_semaphore, #tpu.memory_space<semaphore_mem>>) attributes {dimension_semantics = [], scalar_prefetch = 0 : i64, scratch_operands = 1 : i64, tpu.core_type = #tpu.core_type<tc>} {
    tpu.enqueue_dma source(%arg0 : memref<2x4xf32, #tpu.memory_space<any>>) target(%arg1 : memref<2x4xf32, #tpu.memory_space<any>>) target_semaphore(%arg2 : memref<!tpu.dma_semaphore, #tpu.memory_space<semaphore_mem>>)
    tpu.wait_dma2 semaphore(%arg2 : memref<!tpu.dma_semaphore, #tpu.memory_space<semaphore_mem>>) src(%arg0 : memref<2x4xf32, #tpu.memory_space<any>>) dst(%arg1 : memref<2x4xf32, #tpu.memory_space<any>>)
    return
  }
}

</mosaic_0001>

<bundles_post_ra>
// kernel: tpu_custom_call.1
= control target key start
LH: loop header
LB: loop body
LE: loop exit
PB: predicated region body
PF: predicated region fallthrough
CT: control target
= control target key end

     0   :  { %s34_s6 = smov [#allocation2]   ;;  %s35_s7 = smov [#allocation3]   ;;  %s53_s0 = inlined_call_operand.hbm [shape: f32[2,4], index: 0, kind: input, shape index: {}]   ;;  %s54_s1 = inlined_call_operand.hbm [shape: f32[2,4], index: 1, kind: output, shape index: {}]  }
   0x1   :  { %s36_s8 = smov 0  }
   0x2   :  { %18 = dma.general %s53_s0, 32, %s54_s1, %s34_s6, %s35_s7, [#allocation4], %s36_s8, 0  }
   0x3   :  { %32 = dma.done.wait [#allocation2], 32 }
   0x4   :  { %33 = vsyncadd [#allocation2], 4294967264 }
   0x5   :  { %22 = vsyncmov [#allocation2] }
   0x8   :  { %s23_s13 = vpop.sfrf %22 }
   0x9   :  { %p28_p0 = scmp.ne.s32.totalorder %s23_s13, 0 }
   0xb   :  { %27 = shalt.err (%p28_p0)  }

</bundles_post_ra>
